<compile_context>
chip_gen: v7x
topology: tpu7x:2x2x1
jax: 0.10.0
libtpu: 0.0.40
codegen_flags: <defaults>
</compile_context>

<pallas_src>
import functools

import jax
import jax.numpy as jnp
from jax.experimental import pallas as pl
from jax.experimental.pallas import tpu as pltpu

IN, OUT = 256, 256


def _round_up(n: int, m: int) -> int:
    return (n + m - 1) // m * m


def linear_hardsigmoid_kernel(x_ref, w_ref, b_ref, o_ref):
    # bf16 x bf16 MXU matmul, f32 accumulate.
    y = jnp.dot(x_ref[...], w_ref[...], preferred_element_type=jnp.float32)
    y = y + b_ref[...]                          # (1, OUT) f32 bias (affine pre-folded)
    y = jnp.minimum(jnp.maximum(y, 0.0), 1.0)   # clip to [0, 1]  (== hardsigmoid)
    o_ref[...] = y.astype(o_ref.dtype)


@functools.partial(jax.jit, static_argnames=("tm", "out_dtype"))
def linear_hardsigmoid(x_bf16, w_t_bf16, b_f32, *, tm=256, out_dtype=jnp.float32):
    """clip(x @ W' + b', 0, 1) with W' = W^T/6, b' = (b+3)/6.

    x_bf16:   (B, IN)  bf16
    w_t_bf16: (IN, OUT) bf16  (pre-transposed, pre-folded by /6)
    b_f32:    (1, OUT) f32    (pre-folded (b+3)/6)
    """
    B = x_bf16.shape[0]
    in_dim = x_bf16.shape[1]
    out_dim = w_t_bf16.shape[1]

    # Row tile: multiple of 16 (bf16 sublane pack, unmasked f32 stores),
    # capped at `tm` (256 rows == one full MXU M dimension pass, ~0.5 MiB/tile).
    tm_eff = min(tm, _round_up(B, 16))
    b_pad = _round_up(B, tm_eff)
    if b_pad != B:
        x_bf16 = jnp.pad(x_bf16, ((0, b_pad - B), (0, 0)))
    grid = (b_pad // tm_eff,)

    out_bytes = jnp.dtype(out_dtype).itemsize
    cost = pl.CostEstimate(
        flops=2 * b_pad * in_dim * out_dim,
        transcendentals=0,
        bytes_accessed=b_pad * in_dim * 2 + in_dim * out_dim * 2
        + out_dim * 4 + b_pad * out_dim * out_bytes,
    )

    out = pl.pallas_call(
        linear_hardsigmoid_kernel,
        out_shape=jax.ShapeDtypeStruct((b_pad, out_dim), out_dtype),
        grid_spec=pltpu.PrefetchScalarGridSpec(
            num_scalar_prefetch=0,
            grid=grid,
            in_specs=[
                # Row tile marches over the batch.
                pl.BlockSpec((tm_eff, in_dim), lambda i: (i, 0)),
                # Weights + bias: same block every step -> stay resident in VMEM.
                pl.BlockSpec((in_dim, out_dim), lambda i: (0, 0)),
                pl.BlockSpec((1, out_dim), lambda i: (0, 0)),
            ],
            out_specs=pl.BlockSpec((tm_eff, out_dim), lambda i: (i, 0)),
        ),
        compiler_params=pltpu.CompilerParams(
            dimension_semantics=("parallel",)),   # 2 TCs on v7x shard row tiles
        cost_estimate=cost,
    )(x_bf16, w_t_bf16, b_f32)

    return out[:B] if b_pad != B else out


def fold_params(w_f32, b_f32):
    """One-time host-side parameter prep:
    (x @ W^T + b + 3)/6 clamped  ==  clip(x @ (W^T/6) + (b+3)/6, 0, 1)."""
    w_t_folded = (jnp.transpose(w_f32) / 6.0).astype(jnp.bfloat16)   # (IN, OUT)
    b_folded = ((b_f32 + 3.0) / 6.0).reshape(1, -1).astype(jnp.float32)
    return w_t_folded, b_folded


if __name__ == "__main__":
    key = jax.random.PRNGKey(0)
    k_x, k_w, k_b, k_xb = jax.random.split(key, 4)

    # Deterministic PyTorch-Linear-style init: U(-1/sqrt(in), 1/sqrt(in)).
    bound = 1.0 / jnp.sqrt(jnp.float32(IN))
    w = jax.random.uniform(k_w, (OUT, IN), jnp.float32, -bound, bound)  # (out, in)
    b = jax.random.uniform(k_b, (OUT,), jnp.float32, -bound, bound)
    w_t_bf16, b_folded = fold_params(w, b)

    def reference_bf16_consistent(x_bf16):
        # Same bf16-rounded matmul operands, f32 math.
        y = x_bf16.astype(jnp.float32) @ w_t_bf16.astype(jnp.float32) + b_folded
        return jnp.clip(y, 0.0, 1.0)

    def reference_original(x_f32):
        # Original module semantics, full f32.
        y = x_f32 @ jnp.transpose(w) + b
        return jnp.clip(y + 3.0, 0.0, 6.0) / 6.0

    # ---- Case 1: the module's own shape, (1, 256). ----
    x2 = jax.random.normal(k_x, (1, IN), jnp.float32)
    x2_bf16 = x2.astype(jnp.bfloat16)
    out1 = linear_hardsigmoid(x2_bf16, w_t_bf16, b_folded)
    jax.block_until_ready(out1)
    assert out1.shape == (1, OUT) and out1.dtype == jnp.float32
    assert jnp.allclose(out1, reference_bf16_consistent(x2_bf16), atol=1e-3, rtol=1e-3)
    # Sanity-check against the unfolded f32 PyTorch semantics (bf16 rounding slack).
    assert jnp.allclose(out1, reference_original(x2), atol=1e-2, rtol=1e-2)

    # ---- Case 2: batched rows (amortized weight DMA, grid exercises weight
    #              residency + parallel row-tile axis). ----
    BB = 512
    xb = jax.random.normal(k_xb, (BB, IN), jnp.float32)
    xb_bf16 = xb.astype(jnp.bfloat16)
    out2 = linear_hardsigmoid(xb_bf16, w_t_bf16, b_folded, tm=128)
    jax.block_until_ready(out2)
    assert out2.shape == (BB, OUT) and out2.dtype == jnp.float32
    assert jnp.allclose(out2, reference_bf16_consistent(xb_bf16), atol=1e-3, rtol=1e-3)
    assert jnp.allclose(out2, reference_original(xb), atol=1e-2, rtol=1e-2)

    print("KERNEL_OK")
</pallas_src>

<mosaic_0001>
module attributes {stable_mosaic.version = 11 : i64} {
  func.func @linear_hardsigmoid_kernel(%arg0: i32, %arg1: memref<16x256xbf16, #tpu.memory_space<vmem>>, %arg2: memref<256x256xbf16, #tpu.memory_space<vmem>>, %arg3: memref<1x256xf32, #tpu.memory_space<vmem>>, %arg4: memref<16x256xf32, #tpu.memory_space<vmem>>) attributes {dimension_semantics = [#tpu.dimension_semantics<parallel>], iteration_bounds = array<i64: 1>, scalar_prefetch = 0 : i64, scratch_operands = 0 : i64, tpu.core_type = #tpu.core_type<tc>, window_params = [{transform_indices = @transform_0, window_bounds = array<i64: 16, 256>}, {pipeline_mode = #tpu.pipeline_mode<synchronous>, transform_indices = @transform_1, window_bounds = array<i64: 256, 256>}, {pipeline_mode = #tpu.pipeline_mode<synchronous>, transform_indices = @transform_2, window_bounds = array<i64: 1, 256>}, {transform_indices = @transform_3, window_bounds = array<i64: 16, 256>}]} {
    %c0 = arith.constant 0 : index
    %c0_0 = arith.constant 0 : index
    %0 = vector.load %arg1[%c0, %c0_0] : memref<16x256xbf16, #tpu.memory_space<vmem>>, vector<16x256xbf16>
    %c0_1 = arith.constant 0 : index
    %c0_2 = arith.constant 0 : index
    %1 = vector.load %arg2[%c0_1, %c0_2] : memref<256x256xbf16, #tpu.memory_space<vmem>>, vector<256x256xbf16>
    %cst = arith.constant dense<0.000000e+00> : vector<16x256xf32>
    %2 = tpu.matmul %0, %1, %cst {dimension_numbers = #tpu.dot_dimension_numbers<[1], [0], [0], [1], [0, 0, 1, 1], [], []>} : vector<16x256xbf16>, vector<256x256xbf16>, vector<16x256xf32> -> vector<16x256xf32>
    %c0_3 = arith.constant 0 : index
    %c0_4 = arith.constant 0 : index
    %3 = vector.load %arg3[%c0_3, %c0_4] : memref<1x256xf32, #tpu.memory_space<vmem>>, vector<1x256xf32>
    %4 = vector.broadcast %3 : vector<1x256xf32> to vector<16x256xf32>
    %5 = arith.addf %2, %4 : vector<16x256xf32>
    %cst_5 = arith.constant 0.000000e+00 : f32
    %6 = vector.broadcast %cst_5 : f32 to vector<16x256xf32>
    %7 = arith.maximumf %5, %6 : vector<16x256xf32>
    %cst_6 = arith.constant 1.000000e+00 : f32
    %8 = vector.broadcast %cst_6 : f32 to vector<16x256xf32>
    %9 = arith.minimumf %7, %8 : vector<16x256xf32>
    %c0_7 = arith.constant 0 : index
    %c0_8 = arith.constant 0 : index
    %10 = vector.load %arg4[%c0_7, %c0_8] : memref<16x256xf32, #tpu.memory_space<vmem>>, vector<16x256xf32>
    tpu.vector_store %arg4[%c0_7, %c0_8], %9 {strides = array<i32>} : memref<16x256xf32, #tpu.memory_space<vmem>>, vector<16x256xf32>,
    return
  }
  func.func @transform_0(%arg0: i32) -> (i32, i32) {
    %c0_i32 = arith.constant 0 : i32
    %c0_i32_0 = arith.constant 0 : i32
    return %arg0, %c0_i32 : i32, i32
  }
  func.func @transform_1(%arg0: i32) -> (i32, i32) {
    %c0_i32 = arith.constant 0 : i32
    %c0_i32_0 = arith.constant 0 : i32
    %c0_i32_1 = arith.constant 0 : i32
    return %c0_i32, %c0_i32_0 : i32, i32
  }
  func.func @transform_2(%arg0: i32) -> (i32, i32) {
    %c0_i32 = arith.constant 0 : i32
    %c0_i32_0 = arith.constant 0 : i32
    %c0_i32_1 = arith.constant 0 : i32
    return %c0_i32, %c0_i32_0 : i32, i32
  }
  func.func @transform_3(%arg0: i32) -> (i32, i32) {
    %c0_i32 = arith.constant 0 : i32
    %c0_i32_0 = arith.constant 0 : i32
    return %arg0, %c0_i32 : i32, i32
  }
}

</mosaic_0001>

<bundles_post_ra>
// kernel: linear_hardsigmoid.1
= control target key start
LH: loop header
LB: loop body
LE: loop exit
PB: predicated region body
PF: predicated region fallthrough
CT: control target
= control target key end

     0   :  { %8 = vsyncpa [#allocation3], 0  ;;  %s416_s12 = smov [#allocation2]   ;;  %s472_s0 = inlined_call_operand.vmem [shape: bf16[16,256], index: 0, kind: input, shape index: {}]   ;;  %s473_s1 = inlined_call_operand.hbm [shape: bf16[256,256], index: 1, kind: input, shape index: {}]   ;;  %s474_s2 = inlined_call_operand.vmem [shape: f32[1,256], index: 2, kind: input, shape index: {}]   ;;  %s475_s3 = inlined_call_operand.vmem [shape: f32[16,256], index: 3, kind: output, shape index: {}]  }
   0x1   :  { %s16_s13 = sshll.u32 %s416_s12, 4  ;;  %s392_s16 = scalar_lea.hbm %s473_s1, 4096  ;;  %s17_s13 = int_to_ptr.vmem [resolvable:$true] %s16_s13 }
   0x2   :  { %p393_p0 = scmp.ne.s32.totalorder %s473_s1, %s392_s16  ;;  %p396_p1 = scmp.lt.u32.totalorder %s392_s16, %s473_s1 }
   0x4   :  { %p398_p2 = pnand %p396_p1, %p393_p0 }
   0x6   :  { %401 = shalt.err (!%p398_p2)
}
   0x7   :  { %s402_s21 = scalar_lea.vmem %s17_s13, 4096  ;;  %p407_p4 = scmp.lt.s32.totalorder %s17_s13, %s17_s13 }
   0x8   :  { %p403_p3 = scmp.ne.s32.totalorder %s17_s13, %s402_s21  ;;  %p408_p5 = scmp.lt.s32.totalorder %s402_s21, %s402_s21 }
   0xa   :  { %p409_p6 = por %p408_p5, %p407_p4 }
   0xc   :  { %p410_p7 = pnand %p409_p6, %p403_p3 }
   0xe   :  { %413 = shalt.err (!%p410_p7)
}
   0xf   :  { %s417_s22 = smov 128   ;;  %s418_s23 = smov 8  }
  0x10   :  { %22 = dma.hbm_to_vmem [thread:$0]  %s473_s1, 4096, %s17_s13, [#allocation3], %s417_s22, %s417_s22, %s418_s23  }
  0x11   :  { %414 = dma.done.wait [#allocation3], 4096  }
  0x12   :  { %415 = vsyncadd [#allocation3], 4294963200  ;;  %v341_v0 = vld [vmem:[#allocation2 + $0x4] ss:$8 sps:$4 sm:$0xff]   ;;  %v343_v1 = vld [vmem:[#allocation2] ss:$8 sps:$4 sm:$0xff]   ;;  %v64_v34 = vlaneseq }
  0x13   :  { %244 = vmatprep.subr.bf16.mxu0 %v341_v0  ;;  %v344_v2 = vld [vmem:[#allocation2 + $0x14] ss:$8 sps:$4 sm:$0xff]   ;;  %v346_v3 = vld [vmem:[#allocation2 + $0x10] ss:$8 sps:$4 sm:$0xff]   ;;  %v347_v4 = vld [vmem:[#allocation2 + $0x24] ss:$8 sps:$4 sm:$0xff]  }
  0x14   :  { %245 = vmatpush1.bf16.msra.mxu0 %v343_v1  ;;  %v349_v5 = vld [vmem:[#allocation2 + $0x20] ss:$8 sps:$4 sm:$0xff]   ;;  %v350_v6 = vld [vmem:[#allocation2 + $0x34] ss:$8 sps:$4 sm:$0xff]   ;;  %v352_v7 = vld [vmem:[#allocation2 + $0x30] ss:$8 sps:$4 sm:$0xff]  }
  0x15   :  { %246 = vmatprep.subr.bf16.mxu0 %v344_v2  ;;  %v353_v8 = vld [vmem:[#allocation2 + $0x44] ss:$8 sps:$4 sm:$0xff]   ;;  %v355_v9 = vld [vmem:[#allocation2 + $0x40] ss:$8 sps:$4 sm:$0xff]   ;;  %v356_v10 = vld [vmem:[#allocation2 + $0x54] ss:$8 sps:$4 sm:$0xff]  }
  0x16   :  { %v358_v11 = vld [vmem:[#allocation2 + $0x50] ss:$8 sps:$4 sm:$0xff]   ;;  %v359_v12 = vld [vmem:[#allocation2 + $0x64] ss:$8 sps:$4 sm:$0xff]   ;;  %v361_v14 = vld [vmem:[#allocation2 + $0x60] ss:$8 sps:$4 sm:$0xff]  }
  0x17   :  { %v391_v13 = vld [vmem:[%s472_s0 + $0x4] ss:$8 sps:$4 sm:$0xff]   ;;  %v362_v15 = vld [vmem:[#allocation2 + $0x74] ss:$8 sps:$4 sm:$0xff]   ;;  %v364_v16 = vld [vmem:[#allocation2 + $0x70] ss:$8 sps:$4 sm:$0xff]  }
  0x18   :  { %247 = vmatpush1.bf16.msra.mxu0 %v346_v3  ;;  %276 = vmatprep.mubr.bf16.mxu0 %v391_v13  ;;  %v365_v17 = vld [vmem:[#allocation2 + $0x84] ss:$8 sps:$4 sm:$0xff]   ;;  %v367_v18 = vld [vmem:[#allocation2 + $0x80] ss:$8 sps:$4 sm:$0xff]   ;;  %v368_v19 = vld [vmem:[#allocation2 + $0x94] ss:$8 sps:$4 sm:$0xff]  }
  0x19   :  { %248 = vmatprep.subr.bf16.mxu0 %v347_v4  ;;  %v370_v20 = vld [vmem:[#allocation2 + $0x90] ss:$8 sps:$4 sm:$0xff]   ;;  %v371_v21 = vld [vmem:[#allocation2 + $0xa4] ss:$8 sps:$4 sm:$0xff]   ;;  %v373_v22 = vld [vmem:[#allocation2 + $0xa0] ss:$8 sps:$4 sm:$0xff]  }
  0x1a   :  { %v374_v23 = vld [vmem:[#allocation2 + $0xb4] ss:$8 sps:$4 sm:$0xff]   ;;  %v376_v24 = vld [vmem:[#allocation2 + $0xb0] ss:$8 sps:$4 sm:$0xff]   ;;  %v377_v25 = vld [vmem:[#allocation2 + $0xc4] ss:$8 sps:$4 sm:$0xff]  }
  0x1b   :  { %v379_v26 = vld [vmem:[#allocation2 + $0xc0] ss:$8 sps:$4 sm:$0xff]   ;;  %v380_v27 = vld [vmem:[#allocation2 + $0xd4] ss:$8 sps:$4 sm:$0xff]   ;;  %v382_v28 = vld [vmem:[#allocation2 + $0xd0] ss:$8 sps:$4 sm:$0xff]  }
  0x1c   :  { %249 = vmatpush1.bf16.msra.mxu0 %v349_v5  ;;  %v383_v29 = vld [vmem:[#allocation2 + $0xe4] ss:$8 sps:$4 sm:$0xff]   ;;  %v385_v30 = vld [vmem:[#allocation2 + $0xe0] ss:$8 sps:$4 sm:$0xff]   ;;  %v386_v31 = vld [vmem:[#allocation2 + $0xf4] ss:$8 sps:$4 sm:$0xff]  }
  0x1d   :  { %250 = vmatprep.subr.bf16.mxu0 %v350_v6  ;;  %v388_v32 = vld [vmem:[#allocation2 + $0xf0] ss:$8 sps:$4 sm:$0xff]   ;;  %v389_v33 = vld [vmem:[%s472_s0] ss:$8 sps:$4 sm:$0xff]   ;;  %v65_v35 = vshrl.u32 %v64_v34, 7 }
  0x1e   :  { %v62_v37 = vld [vmem:[%s474_s2] sm:$0x3] }
  0x1f   :  { %v66_v36 = vsub.s32 0, %v65_v35  ;;  %v70_v38 = vsub.s32 1, %v65_v35 }
  0x20   :  { %251 = vmatpush1.bf16.msra.mxu0 %v352_v7 }
  0x21   :  { %252 = vmatprep.subr.bf16.mxu0 %v353_v8  ;;  %v67_v39 = vrot.slane %v62_v37, %v66_v36  ;;  %v71_v40 = vrot.slane %v62_v37, %v70_v38 }
  0x24   :  { %253 = vmatpush1.bf16.msra.mxu0 %v355_v9 }
  0x25   :  { %254 = vmatprep.subr.bf16.mxu0 %v356_v10 }
  0x28   :  { %255 = vmatpush1.bf16.msra.mxu0 %v358_v11 }
  0x29   :  { %256 = vmatprep.subr.bf16.mxu0 %v359_v12 }
  0x2c   :  { %257 = vmatpush1.bf16.msra.mxu0 %v361_v14 }
  0x2d   :  { %258 = vmatprep.subr.bf16.mxu0 %v362_v15 }
  0x30   :  { %259 = vmatpush1.bf16.msra.mxu0 %v364_v16 }
  0x31   :  { %260 = vmatprep.subr.bf16.mxu0 %v365_v17 }
  0x34   :  { %261 = vmatpush1.bf16.msra.mxu0 %v367_v18 }
  0x35   :  { %262 = vmatprep.subr.bf16.mxu0 %v368_v19 }
  0x38   :  { %263 = vmatpush1.bf16.msra.mxu0 %v370_v20 }
  0x39   :  { %264 = vmatprep.subr.bf16.mxu0 %v371_v21 }
  0x3c   :  { %265 = vmatpush1.bf16.msra.mxu0 %v373_v22 }
  0x3d   :  { %266 = vmatprep.subr.bf16.mxu0 %v374_v23 }
  0x40   :  { %267 = vmatpush1.bf16.msra.mxu0 %v376_v24 }
  0x41   :  { %268 = vmatprep.subr.bf16.mxu0 %v377_v25 }
  0x44   :  { %269 = vmatpush1.bf16.msra.mxu0 %v379_v26 }
  0x45   :  { %270 = vmatprep.subr.bf16.mxu0 %v380_v27 }
  0x48   :  { %271 = vmatpush1.bf16.msra.mxu0 %v382_v28 }
  0x49   :  { %272 = vmatprep.subr.bf16.mxu0 %v383_v29 }
  0x4c   :  { %273 = vmatpush1.bf16.msra.mxu0 %v385_v30 }
  0x4d   :  { %274 = vmatprep.subr.bf16.mxu0 %v386_v31 }
  0x50   :  { %275 = vmatpush1.bf16.msra.mxu0 %v388_v32 }
  0x53   :  { %277 = vmatmul.mubr.bf16.vlgmr.msra.gmra.mrb[0].mxu0 %v389_v33 }
 0x126   :  { %v278_v41 = vpop.f32.mrb[0].mxu0 }
 0x127   :  { %v279_v42 = vadd.f32 %v278_v41, %v67_v39  ;;  %v280_v43 = vpop.f32.mrb[1].mxu0 }
 0x128   :  { %v281_v44 = vadd.f32 %v280_v43, %v71_v40  ;;  %v282_v45 = vpop.f32.mrb[2].mxu0 }
 0x129   :  { %v287_v46 = vmax.f32 %v279_v42, 0.0  ;;  %v283_v47 = vadd.f32 %v282_v45, %v67_v39  ;;  %v284_v48 = vpop.f32.mrb[3].mxu0 }
 0x12a   :  { %v288_v49 = vmax.f32 %v281_v44, 0.0  ;;  %v285_v50 = vadd.f32 %v284_v48, %v71_v40 }
 0x12b   :  { %v291_v51 = vmin.f32 %v287_v46, 1.0  ;;  %v289_v52 = vmax.f32 %v283_v47, 0.0 }
 0x12c   :  { %v292_v53 = vmin.f32 %v288_v49, 1.0  ;;  %v290_v54 = vmax.f32 %v285_v50, 0.0 }
 0x12d   :  { %295 = vst [vmem:[%s475_s3] sm:$0xff] %v291_v51  ;;  %v293_v55 = vmin.f32 %v289_v52, 1.0 }
 0x12e   :  { %296 = vst [vmem:[%s475_s3 + $0x8] sm:$0xff] %v292_v53  ;;  %v294_v56 = vmin.f32 %v290_v54, 1.0 }
 0x12f   :  { %297 = vst [vmem:[%s475_s3 + $0x10] sm:$0xff] %v293_v55 }
 0x130   :  { %298 = vst [vmem:[%s475_s3 + $0x18] sm:$0xff] %v294_v56 }
 0x131   :  { %303 = vsyncpa [#allocation3], 1 }

</bundles_post_ra>
